<compile_context>
chip_gen: v5e
topology: v5e:2x2
jax: 0.10.0
libtpu: 0.0.40
codegen_flags: <defaults>
</compile_context>

<pallas_src>
import math
from functools import partial

import jax
import jax.numpy as jnp
from jax import lax
from jax.experimental import pallas as pl
from jax.experimental.pallas import tpu as pltpu

LANE = 128
SQ_BLOCK_ROWS = 8192     # (8192,128) f32 = 4 MiB per input block (2 inputs)
LOG_BLOCK_ROWS = 16384   # (16384,128) f32 = 8 MiB per block (1 input)
VMEM_LIMIT = 32 << 20    # explicit; safe on v5e/v6e (128 MiB) and v7x (64 MiB)


def _round_up(x, m):
    return ((x + m - 1) // m) * m


def _num_tensorcores():
    """TensorCores per device: 1 on v5e/v6e, 2 on v7x.  Defaults to 1."""
    try:
        info = pltpu.get_tpu_info()
    except Exception:
        return 1
    for attr in ("num_cores", "num_tensorcores", "tensorcores_per_chip",
                 "cores_per_chip"):
        v = getattr(info, attr, None)
        if isinstance(v, int) and v > 0:
            return min(v, 2)
    return 1


_NUM_TC = _num_tensorcores()


def _sq_diff_partial_kernel(x_ref, t_ref, o_ref, *, rows, block_rows,
                            blocks_per_core, needs_mask):
    c = pl.program_id(0)   # partial / core index (parallel axis)
    j = pl.program_id(1)   # block index within this partial (arbitrary axis)

    @pl.when(j == 0)
    def _init():
        o_ref[...] = jnp.zeros_like(o_ref)

    def fold(d):
        return jnp.sum((d * d).reshape(block_rows // 8, 8, LANE), axis=0)

    if not needs_mask:
        # All blocks are fully in-bounds: pure sub/mul/add, no mask work.
        o_ref[...] += fold(x_ref[...] - t_ref[...])
    else:
        blk = c * blocks_per_core + j
        num_full = rows // block_rows  # static

        @pl.when(blk < num_full)
        def _fast():
            o_ref[...] += fold(x_ref[...] - t_ref[...])

        @pl.when(blk >= num_full)
        def _masked():
            # Ragged last block, or clamped idle block past the data.
            row_ids = blk * block_rows + lax.broadcasted_iota(
                jnp.int32, (block_rows, 1), 0)
            d = jnp.where(row_ids < rows, x_ref[...] - t_ref[...], 0.0)
            o_ref[...] += fold(d)


def _log_sum_partial_kernel(x_ref, o_ref, *, rows, block_rows,
                            blocks_per_core, needs_mask):
    c = pl.program_id(0)
    j = pl.program_id(1)

    @pl.when(j == 0)
    def _init():
        o_ref[...] = jnp.zeros_like(o_ref)

    def fold(v):
        return jnp.sum(jnp.log(v).reshape(block_rows // 8, 8, LANE), axis=0)

    if not needs_mask:
        o_ref[...] += fold(x_ref[...])
    else:
        blk = c * blocks_per_core + j
        num_full = rows // block_rows

        @pl.when(blk < num_full)
        def _fast():
            o_ref[...] += fold(x_ref[...])

        @pl.when(blk >= num_full)
        def _masked():
            row_ids = blk * block_rows + lax.broadcasted_iota(
                jnp.int32, (block_rows, 1), 0)
            v = jnp.where(row_ids < rows, x_ref[...], 1.0)  # log(1) = 0
            o_ref[...] += fold(v)


def _partial_reduce(kernel_body, arrays, rows, *, block_rows_cap, cost):
    """Block-accumulating global reduction over (rows, 128) slabs -> scalar."""
    block_rows = min(block_rows_cap, _round_up(rows, 8))
    num_blocks = pl.cdiv(rows, block_rows)
    # 2-way split only on multi-TC chips with enough blocks to keep both busy.
    num_partials = _NUM_TC if num_blocks >= _NUM_TC else 1
    blocks_per_core = pl.cdiv(num_blocks, num_partials)
    # Mask path only emitted if a ragged or idle (clamped) block can exist.
    needs_mask = (rows % block_rows != 0) or (
        num_partials * blocks_per_core != num_blocks)

    kernel = partial(kernel_body, rows=rows, block_rows=block_rows,
                     blocks_per_core=blocks_per_core, needs_mask=needs_mask)

    def in_map(c, j):
        # Clamp so idle tail steps of the second partial re-read a valid block;
        # their contribution is zeroed by the in-kernel row mask.
        return (jnp.minimum(c * blocks_per_core + j, num_blocks - 1), 0)

    # TODO(synk): consider pipeline_mode=pl.Buffered(3) on the single-input log
    # kernel if a v7x bundle dump still shows exposed DMA at this block size.
    in_specs = [pl.BlockSpec((block_rows, LANE), in_map) for _ in arrays]

    partials = pl.pallas_call(
        kernel,
        out_shape=jax.ShapeDtypeStruct((num_partials * 8, LANE), jnp.float32),
        grid_spec=pltpu.PrefetchScalarGridSpec(
            num_scalar_prefetch=0,
            grid=(num_partials, blocks_per_core),
            in_specs=in_specs,
            out_specs=pl.BlockSpec((8, LANE), lambda c, j: (c, 0)),
        ),
        compiler_params=pltpu.CompilerParams(
            dimension_semantics=("parallel", "arbitrary"),
            vmem_limit_bytes=VMEM_LIMIT,
        ),
        cost_estimate=cost,
    )(*arrays)
    # Final (num_partials*8*128)-element reduction is tiny; do it in plain JAX.
    return jnp.sum(partials)


def _sum_sq_diff(x, t):
    """sum((x - t)^2) over all elements."""
    xf = x.reshape(-1).astype(jnp.float32)
    tf = t.reshape(-1).astype(jnp.float32)
    n = xf.shape[0]
    rows = n // LANE
    n_main = rows * LANE
    total = jnp.float32(0.0)
    if rows > 0:
        x_slab = xf[:n_main].reshape(rows, LANE)
        t_slab = tf[:n_main].reshape(rows, LANE)
        total = total + _partial_reduce(
            _sq_diff_partial_kernel, [x_slab, t_slab], rows,
            block_rows_cap=SQ_BLOCK_ROWS,
            cost=pl.CostEstimate(flops=3 * n_main, transcendentals=0,
                                 bytes_accessed=8 * n_main))
    if n_main < n:
        # <128-element ragged lane tail folded in plain JAX (no pad copy).
        d = xf[n_main:] - tf[n_main:]
        total = total + jnp.sum(d * d)
    return total


def _sum_log(x):
    """sum(log(x)) over all elements."""
    xf = x.reshape(-1).astype(jnp.float32)
    n = xf.shape[0]
    rows = n // LANE
    n_main = rows * LANE
    total = jnp.float32(0.0)
    if rows > 0:
        slab = xf[:n_main].reshape(rows, LANE)
        total = total + _partial_reduce(
            _log_sum_partial_kernel, [slab], rows,
            block_rows_cap=LOG_BLOCK_ROWS,
            cost=pl.CostEstimate(flops=n_main, transcendentals=n_main,
                                 bytes_accessed=4 * n_main))
    if n_main < n:
        total = total + jnp.sum(jnp.log(xf[n_main:]))
    return total


def rate_distortion_loss(output, target, lmbda=0.01):
    """JAX/Pallas port of RateDistortionLoss.forward.

    output: {'x_hat': f32[N,C,H,W], 'likelihoods': {name: f32[...] in (0,1]}}
    target: f32[N,C,H,W]
    """
    N, _, H, W = target.shape
    num_pixels = N * H * W

    # --- distortion: MSE over all elements of x_hat / target -----------------
    sq_sum = _sum_sq_diff(output["x_hat"], target)
    mse_loss = sq_sum / jnp.float32(target.size)

    # --- rate: sum over likelihood tensors of sum(log(.)) --------------------
    liks = list(output["likelihoods"].values())
    if liks:
        log_sum = sum(_sum_log(l) for l in liks)
        bpp_loss = log_sum / (-math.log(2) * num_pixels)
    else:
        bpp_loss = jnp.float32(0.0)

    # PSNR assumes a signal peak of 1.0 (inputs in [0, 1]).
    psnr = 10.0 * jnp.log(1.0 / mse_loss) / math.log(10)
    loss = lmbda * (255.0 ** 2) * mse_loss + bpp_loss

    return {"bpp_loss": bpp_loss, "mse_loss": mse_loss, "psnr": psnr, "loss": loss}


if __name__ == "__main__":
    key = jax.random.PRNGKey(0)
    k1, k2, k3, k4 = jax.random.split(key, 4)

    N, C, H, W = 2, 3, 16, 16
    target = jax.random.uniform(k1, (N, C, H, W), dtype=jnp.float32)
    x_hat = jnp.clip(target + 0.05 * jax.random.normal(k2, (N, C, H, W)), 0.0, 1.0)

    # Typical compression-model likelihoods (values in (0, 1]).
    lik_y = jax.random.uniform(k3, (N, 8, H // 4, W // 4), dtype=jnp.float32,
                               minval=0.05, maxval=1.0)
    lik_z = jax.random.uniform(k4, (N, 4, H // 8, W // 8), dtype=jnp.float32,
                               minval=0.05, maxval=1.0)

    output = {"x_hat": x_hat, "likelihoods": {"y": lik_y, "z": lik_z}}

    out = rate_distortion_loss(output, target, lmbda=0.01)
    jax.block_until_ready(out)

    # Sanity check against a pure-JAX reference.
    num_pixels = N * H * W
    ref_mse = jnp.mean((x_hat - target) ** 2)
    ref_bpp = (jnp.sum(jnp.log(lik_y)) + jnp.sum(jnp.log(lik_z))) / (
        -math.log(2) * num_pixels
    )
    ref_loss = 0.01 * 255.0 ** 2 * ref_mse + ref_bpp
    assert jnp.allclose(out["mse_loss"], ref_mse, rtol=1e-5, atol=1e-6)
    assert jnp.allclose(out["bpp_loss"], ref_bpp, rtol=1e-5, atol=1e-6)
    assert jnp.allclose(out["loss"], ref_loss, rtol=1e-5, atol=1e-6)

    print("KERNEL_OK")
</pallas_src>

<mosaic_0001>
module attributes {stable_mosaic.version = 11 : i64} {
  func.func @_sq_diff_partial_kernel(%arg0: i32, %arg1: i32, %arg2: memref<16x128xf32, #tpu.memory_space<vmem>>, %arg3: memref<16x128xf32, #tpu.memory_space<vmem>>, %arg4: memref<8x128xf32, #tpu.memory_space<vmem>>) attributes {dimension_semantics = [#tpu.dimension_semantics<parallel>, #tpu.dimension_semantics<arbitrary>], iteration_bounds = array<i64: 1, 1>, scalar_prefetch = 0 : i64, scratch_operands = 0 : i64, tpu.core_type = #tpu.core_type<tc>, window_params = [{transform_indices = @transform_0, window_bounds = array<i64: 16, 128>}, {transform_indices = @transform_1, window_bounds = array<i64: 16, 128>}, {transform_indices = @transform_2, window_bounds = array<i64: 8, 128>}]} {
    %c0_i32 = arith.constant 0 : i32
    %0 = arith.cmpi eq, %arg1, %c0_i32 : i32
    %1 = arith.extui %0 : i1 to i32
    %c0_i32_0 = arith.constant 0 : i32
    %2 = arith.cmpi ne, %1, %c0_i32_0 : i32
    scf.if %2 {
      %cst = arith.constant 0.000000e+00 : f32
      %11 = vector.broadcast %cst : f32 to vector<8x128xf32>
      %c0 = arith.constant 0 : index
      %c0_5 = arith.constant 0 : index
      %12 = vector.load %arg4[%c0, %c0_5] : memref<8x128xf32, #tpu.memory_space<vmem>>, vector<8x128xf32>
      tpu.vector_store %arg4[%c0, %c0_5], %11 {strides = array<i32>} : memref<8x128xf32, #tpu.memory_space<vmem>>, vector<8x128xf32>,
    } else {
    }
    %c1_i32 = arith.constant 1 : i32
    %3 = arith.muli %arg0, %c1_i32 : i32
    %4 = arith.addi %3, %arg1 : i32
    %c0_i32_1 = arith.constant 0 : i32
    %5 = arith.cmpi slt, %4, %c0_i32_1 : i32
    %6 = arith.extui %5 : i1 to i32
    %c0_i32_2 = arith.constant 0 : i32
    %7 = arith.cmpi ne, %6, %c0_i32_2 : i32
    scf.if %7 {
      %c0 = arith.constant 0 : index
      %c0_5 = arith.constant 0 : index
      %11 = vector.load %arg4[%c0, %c0_5] : memref<8x128xf32, #tpu.memory_space<vmem>>, vector<8x128xf32>
      %c0_6 = arith.constant 0 : index
      %c0_7 = arith.constant 0 : index
      %12 = vector.load %arg2[%c0_6, %c0_7] : memref<16x128xf32, #tpu.memory_space<vmem>>, vector<16x128xf32>
      %c0_8 = arith.constant 0 : index
      %c0_9 = arith.constant 0 : index
      %13 = vector.load %arg3[%c0_8, %c0_9] : memref<16x128xf32, #tpu.memory_space<vmem>>, vector<16x128xf32>
      %14 = arith.subf %12, %13 : vector<16x128xf32>
      %15 = arith.mulf %14, %14 : vector<16x128xf32>
      %16 = vector.shape_cast %15 : vector<16x128xf32> to vector<2x8x128xf32>
      %cst = arith.constant dense<0.000000e+00> : vector<8x128xf32>
      %17 = vector.multi_reduction <add>, %16, %cst [0] : vector<2x8x128xf32> to vector<8x128xf32>
      %18 = arith.addf %11, %17 : vector<8x128xf32>
      %c0_10 = arith.constant 0 : index
      %c0_11 = arith.constant 0 : index
      %19 = vector.load %arg4[%c0_10, %c0_11] : memref<8x128xf32, #tpu.memory_space<vmem>>, vector<8x128xf32>
      tpu.vector_store %arg4[%c0_10, %c0_11], %18 {strides = array<i32>} : memref<8x128xf32, #tpu.memory_space<vmem>>, vector<8x128xf32>,
    } else {
    }
    %c0_i32_3 = arith.constant 0 : i32
    %8 = arith.cmpi sge, %4, %c0_i32_3 : i32
    %9 = arith.extui %8 : i1 to i32
    %c0_i32_4 = arith.constant 0 : i32
    %10 = arith.cmpi ne, %9, %c0_i32_4 : i32
    scf.if %10 {
      %c16_i32 = arith.constant 16 : i32
      %11 = arith.muli %4, %c16_i32 : i32
      %12 = tpu.iota {dimensions = array<i32: 0>} : vector<16x1xi32>
      %13 = vector.broadcast %11 : i32 to vector<16x1xi32>
      %14 = arith.addi %13, %12 : vector<16x1xi32>
      %c12_i32 = arith.constant 12 : i32
      %15 = vector.broadcast %c12_i32 : i32 to vector<16x1xi32>
      %16 = arith.cmpi slt, %14, %15 : vector<16x1xi32>
      %c0 = arith.constant 0 : index
      %c0_5 = arith.constant 0 : index
      %17 = vector.load %arg2[%c0, %c0_5] : memref<16x128xf32, #tpu.memory_space<vmem>>, vector<16x128xf32>
      %c0_6 = arith.constant 0 : index
      %c0_7 = arith.constant 0 : index
      %18 = vector.load %arg3[%c0_6, %c0_7] : memref<16x128xf32, #tpu.memory_space<vmem>>, vector<16x128xf32>
      %19 = arith.subf %17, %18 : vector<16x128xf32>
      %cst = arith.constant 0.000000e+00 : f32
      %20 = vector.shape_cast %16 : vector<16x1xi1> to vector<16x1xi1>
      %21 = vector.broadcast %20 : vector<16x1xi1> to vector<16x128xi1>
      %22 = vector.broadcast %cst : f32 to vector<16x128xf32>
      %23 = arith.select %21, %19, %22 : vector<16x128xi1>, vector<16x128xf32>
      %c0_8 = arith.constant 0 : index
      %c0_9 = arith.constant 0 : index
      %24 = vector.load %arg4[%c0_8, %c0_9] : memref<8x128xf32, #tpu.memory_space<vmem>>, vector<8x128xf32>
      %25 = arith.mulf %23, %23 : vector<16x128xf32>
      %26 = vector.shape_cast %25 : vector<16x128xf32> to vector<2x8x128xf32>
      %cst_10 = arith.constant dense<0.000000e+00> : vector<8x128xf32>
      %27 = vector.multi_reduction <add>, %26, %cst_10 [0] : vector<2x8x128xf32> to vector<8x128xf32>
      %28 = arith.addf %24, %27 : vector<8x128xf32>
      %c0_11 = arith.constant 0 : index
      %c0_12 = arith.constant 0 : index
      %29 = vector.load %arg4[%c0_11, %c0_12] : memref<8x128xf32, #tpu.memory_space<vmem>>, vector<8x128xf32>
      tpu.vector_store %arg4[%c0_11, %c0_12], %28 {strides = array<i32>} : memref<8x128xf32, #tpu.memory_space<vmem>>, vector<8x128xf32>,
    } else {
    }
    return
  }
  func.func @transform_0(%arg0: i32, %arg1: i32) -> (i32, i32) {
    %c1_i32 = arith.constant 1 : i32
    %0 = arith.muli %arg0, %c1_i32 : i32
    %1 = arith.addi %0, %arg1 : i32
    %c0_i32 = arith.constant 0 : i32
    %2 = arith.minsi %1, %c0_i32 : i32
    %c0_i32_0 = arith.constant 0 : i32
    %c0_i32_1 = arith.constant 0 : i32
    return %2, %c0_i32_0 : i32, i32
  }
  func.func @transform_1(%arg0: i32, %arg1: i32) -> (i32, i32) {
    %c1_i32 = arith.constant 1 : i32
    %0 = arith.muli %arg0, %c1_i32 : i32
    %1 = arith.addi %0, %arg1 : i32
    %c0_i32 = arith.constant 0 : i32
    %2 = arith.minsi %1, %c0_i32 : i32
    %c0_i32_0 = arith.constant 0 : i32
    %c0_i32_1 = arith.constant 0 : i32
    return %2, %c0_i32_0 : i32, i32
  }
  func.func @transform_2(%arg0: i32, %arg1: i32) -> (i32, i32) {
    %c0_i32 = arith.constant 0 : i32
    %c0_i32_0 = arith.constant 0 : i32
    return %arg0, %c0_i32 : i32, i32
  }
}

</mosaic_0001>

<bundles_post_ra>
// kernel: tpu_custom_call.1
= control target key start
LH: loop header
LB: loop body
LE: loop exit
PB: predicated region body
PF: predicated region fallthrough
CT: control target
= control target key end

     0   :  { %7 = vsyncpa [#allocation3], 0  ;;  %s252_s0 = inlined_call_operand.hbm [shape: f32[12,128], index: 0, kind: input, shape index: {}]   ;;  %s253_s1 = inlined_call_operand.hbm [shape: f32[12,128], index: 1, kind: input, shape index: {}]   ;;  %s254_s2 = inlined_call_operand.hbm [shape: f32[8,128], index: 2, kind: output, shape index: {}]  }
   0x1   :  { %8 = vsyncpa [#allocation6], 0 }
   0x2   :  { %9 = vsyncpa [#allocation4], 0  ;;  %s20_s11 = sshll.u32 %s252_s0, 4  ;;  %s223_s12 = smov [#allocation2]   ;;  %s21_s11 = int_to_ptr.hbm [resolvable:$true] %s20_s11 }
   0x3   :  { %s22_s13 = sshll.u32 %s223_s12, 4  ;;  %s39_s16 = sshll.u32 %s253_s1, 4  ;;  %s23_s13 = int_to_ptr.vmem [resolvable:$true] %s22_s13  ;;  %s40_s16 = int_to_ptr.hbm [resolvable:$true] %s39_s16 }
   0x4   :  { %s224_s17 = smov 128   ;;  %s225_s18 = smov 8  }
   0x5   :  { %28 = dma.hbm_to_vmem [thread:$0]  %s21_s11, 256, %s23_s13, [#allocation3], %s224_s17, %s224_s17, %s225_s18  }
   0x6   :  { %s226_s19 = smov [#allocation5]  }
   0x7   :  { %s41_s20 = sshll.u32 %s226_s19, 4  ;;  %s42_s20 = int_to_ptr.vmem [resolvable:$true] %s41_s20 }
   0x8   :  { %47 = dma.hbm_to_vmem [thread:$0]  %s40_s16, 256, %s42_s20, [#allocation6], %s224_s17, %s224_s17, %s225_s18  }
   0x9   :  { %217 = dma.done.wait [#allocation3], 256  }
   0xa   :  { %218 = vsyncadd [#allocation3], 4294967040 }
   0xb   :  { %219 = dma.done.wait [#allocation6], 256  }
   0xc   :  { %220 = vsyncadd [#allocation6], 4294967040  ;;  %v91_v0 = vlaneseq  ;;  %v99_v3 = vld [vmem:[#allocation2] sm:$0xff]  ;;  %v100_v4 = vld [vmem:[#allocation2 + $0x8] sm:$0xff]  ;;  %s227_s0 = smov [#allocation7]   ;;  %s124_s23 = sshll.u32 %s254_s2, 4  ;;  %s125_s23 = int_to_ptr.hbm [resolvable:$true] %s124_s23 }
   0xd   :  { %v101_v5 = vld [vmem:[#allocation5] sm:$0xff]  ;;  %v102_v6 = vld [vmem:[#allocation5 + $0x8] sm:$0xff]  ;;  %s122_s1 = sshll.u32 %s227_s0, 4  ;;  %s123_s1 = int_to_ptr.vmem [resolvable:$true] %s122_s1 }
   0xe   :  { %v92_v1 = vshrl.u32 %v91_v0, 7  ;;  %v103_v7 = vsub.f32 %v99_v3, %v101_v5  ;;  %v104_v8 = vsub.f32 %v100_v4, %v102_v6 }
  0x10   :  { %v93_v2 = vadd.s32 8, %v92_v1  ;;  %v112_v9 = vmul.f32 %v103_v7, %v103_v7 }
  0x12   :  { %vm98_vm0 = vcmp.lt.s32.totalorder %v93_v2, 12 }
  0x13   :  { %v110_v10 = vsel %vm98_vm0, %v104_v8, 0.0 }
  0x14   :  { %v113_v11 = vmul.f32 %v110_v10, %v110_v10 }
  0x16   :  { %v114_v12 = vadd.f32 %v113_v11, %v112_v9 }
  0x18   :  { %116 = vst [vmem:[#allocation7] sm:$0xff] %v114_v12 }
  0x19   :  { %127 = dma.vmem_to_hbm [thread:$0]  %s123_s1, 128, %s125_s23, [#allocation4]  }
  0x1a   :  { %221 = dma.done.wait [#allocation4], 128  }
  0x1b   :  { %222 = vsyncadd [#allocation4], 4294967168 }
  0x1c   :  { %132 = vsyncpa [#allocation3], 1 }
  0x1d   :  { %133 = vsyncpa [#allocation6], 1 }
  0x1e   :  { %134 = vsyncpa [#allocation4], 1 }

</bundles_post_ra>
